<compile_context>
chip_gen: v6e
topology: v6e:2x2x1
jax: 0.10.0
libtpu: 0.0.40
codegen_flags: <defaults>
</compile_context>

<pallas_src>
import functools

import jax
import jax.numpy as jnp
from jax.experimental import pallas as pl
from jax.experimental.pallas import tpu as pltpu

_LANES = 3 * 128  # lane-dense width; original column id == lane % 3


def _round_up(x, m):
    return ((x + m - 1) // m) * m


def _soccer_loss_kernel(pred_ref, tgt_ref, out_ref, *, w_goals, w_result):
    # pred_ref / tgt_ref: (block_rows, 384) lane-dense views of the flattened
    # (B, 3) arrays (zero-padded tail on both => padded diffs contribute 0).
    @pl.when(pl.program_id(0) == 0)
    def _init():
        out_ref[...] = jnp.zeros_like(out_ref)

    p = pred_ref[...].astype(jnp.float32)
    t = tgt_ref[...].astype(jnp.float32)
    d = p - t
    sq = d * d

    # Sublane (row) reduction first -> (1, 384), then weight per lane.
    colsum = jnp.sum(sq, axis=0, keepdims=True)

    lane = jax.lax.broadcasted_iota(jnp.int32, (1, _LANES), 1)
    is_result = ((lane % 3) == 2).astype(jnp.float32)        # (1, 384)
    # w_goals / w_result are Python floats (weights / counts pre-folded).
    w = is_result * (w_result - w_goals) + w_goals           # (1, 384)

    partial = jnp.sum(colsum * w)                            # scalar
    out_ref[...] += jnp.reshape(partial, (1, 1))


def soccer_loss(predictions, targets, goals_weight=1.0, result_weight=2.0,
                *, block_rows=1024):
    assert predictions.shape == targets.shape
    B, F = predictions.shape
    assert F == 3, "SoccerLoss expects (batch, 3) inputs"

    rows = pl.cdiv(B, 128)                     # rows of the (rows, 384) layout
    block_rows = _round_up(min(block_rows, max(rows, 1)), 8)
    n_blocks = pl.cdiv(rows, block_rows)
    padded_rows = n_blocks * block_rows

    def to_lane_dense(x):
        flat = x.reshape(-1)
        pad = padded_rows * _LANES - flat.shape[0]
        if pad:
            flat = jnp.pad(flat, (0, pad))
        return flat.reshape(padded_rows, _LANES)

    p2 = to_lane_dense(predictions)
    t2 = to_lane_dense(targets)

    # Fold the MSE denominators and loss weights into per-column constants
    # (Python floats -> jaxpr literals, never captured device constants).
    w_goals = float(goals_weight) / (2.0 * B)
    w_result = float(result_weight) / float(B)

    kernel = functools.partial(
        _soccer_loss_kernel, w_goals=w_goals, w_result=w_result)

    out = pl.pallas_call(
        kernel,
        grid=(n_blocks,),
        in_specs=[
            pl.BlockSpec((block_rows, _LANES), lambda i: (i, 0)),
            pl.BlockSpec((block_rows, _LANES), lambda i: (i, 0)),
        ],
        # Same (full-array) block at every step => resident VMEM accumulator.
        out_specs=pl.BlockSpec((1, 1), lambda i: (0, 0)),
        out_shape=jax.ShapeDtypeStruct((1, 1), jnp.float32),
        compiler_params=pltpu.CompilerParams(
            dimension_semantics=("arbitrary",)),
    )(p2, t2)

    return out[0, 0]


def _reference(predictions, targets, goals_weight=1.0, result_weight=2.0):
    goals_loss = jnp.mean((predictions[:, :2] - targets[:, :2]) ** 2)
    result_loss = jnp.mean((predictions[:, 2] - targets[:, 2]) ** 2)
    return goals_weight * goals_loss + result_weight * result_loss


if __name__ == "__main__":
    key = jax.random.PRNGKey(0)
    k1, k2 = jax.random.split(key)

    B = 8  # batch; features = 3 (home goals, away goals, result)
    predictions = jax.random.normal(k1, (B, 3), dtype=jnp.float32)
    targets = jax.random.normal(k2, (B, 3), dtype=jnp.float32)

    # Deterministic "parameters" from __init__ defaults.
    goals_weight, result_weight = 1.0, 2.0

    loss = soccer_loss(predictions, targets, goals_weight, result_weight)
    loss = jax.block_until_ready(loss)

    ref = _reference(predictions, targets, goals_weight, result_weight)
    assert jnp.allclose(loss, ref, rtol=1e-5, atol=1e-6), (loss, ref)

    print("KERNEL_OK")
</pallas_src>

<mosaic_0001>
module attributes {stable_mosaic.version = 11 : i64} {
  func.func @_soccer_loss_kernel(%arg0: i32, %arg1: memref<8x384xf32, #tpu.memory_space<vmem>>, %arg2: memref<8x384xf32, #tpu.memory_space<vmem>>, %arg3: memref<1x1xf32, #tpu.memory_space<vmem>>) attributes {dimension_semantics = [#tpu.dimension_semantics<arbitrary>], iteration_bounds = array<i64: 1>, scalar_prefetch = 0 : i64, scratch_operands = 0 : i64, tpu.core_type = #tpu.core_type<tc>, window_params = [{transform_indices = @transform_0, window_bounds = array<i64: 8, 384>}, {transform_indices = @transform_1, window_bounds = array<i64: 8, 384>}, {pipeline_mode = #tpu.pipeline_mode<synchronous>, transform_indices = @transform_2, window_bounds = array<i64: 1, 1>}]} {
    %c0_i32 = arith.constant 0 : i32
    %0 = arith.cmpi eq, %arg0, %c0_i32 : i32
    %1 = arith.extui %0 : i1 to i32
    %c0_i32_0 = arith.constant 0 : i32
    %2 = arith.cmpi ne, %1, %c0_i32_0 : i32
    scf.if %2 {
      %cst_15 = arith.constant 0.000000e+00 : f32
      %43 = vector.broadcast %cst_15 : f32 to vector<1x1xf32>
      %c0_16 = arith.constant 0 : index
      %c0_17 = arith.constant 0 : index
      %44 = vector.load %arg3[%c0_16, %c0_17] : memref<1x1xf32, #tpu.memory_space<vmem>>, vector<1x1xf32>
      tpu.vector_store %arg3[%c0_16, %c0_17], %43 {strides = array<i32>} : memref<1x1xf32, #tpu.memory_space<vmem>>, vector<1x1xf32>,
    } else {
    }
    %c0 = arith.constant 0 : index
    %c0_1 = arith.constant 0 : index
    %3 = vector.load %arg1[%c0, %c0_1] : memref<8x384xf32, #tpu.memory_space<vmem>>, vector<8x384xf32>
    %c0_2 = arith.constant 0 : index
    %c0_3 = arith.constant 0 : index
    %4 = vector.load %arg2[%c0_2, %c0_3] : memref<8x384xf32, #tpu.memory_space<vmem>>, vector<8x384xf32>
    %5 = arith.subf %3, %4 : vector<8x384xf32>
    %6 = arith.mulf %5, %5 : vector<8x384xf32>
    %cst = arith.constant dense<0.000000e+00> : vector<384xf32>
    %7 = vector.multi_reduction <add>, %6, %cst [0] : vector<8x384xf32> to vector<384xf32>
    %8 = vector.shape_cast %7 : vector<384xf32> to vector<1x384xf32>
    %9 = tpu.iota {dimensions = array<i32: 1>} : vector<1x384xi32>
    %c3_i32 = arith.constant 3 : i32
    %c0_i32_4 = arith.constant 0 : i32
    %10 = arith.cmpi eq, %c3_i32, %c0_i32_4 : i32
    %c1_i32 = arith.constant 1 : i32
    %11 = arith.select %10, %c1_i32, %c3_i32 : i32
    %12 = vector.broadcast %11 : i32 to vector<1x384xi32>
    %13 = arith.remsi %9, %12 : vector<1x384xi32>
    %c0_i32_5 = arith.constant 0 : i32
    %14 = vector.broadcast %c0_i32_5 : i32 to vector<1x384xi32>
    %15 = arith.cmpi ne, %13, %14 : vector<1x384xi32>
    %c0_i32_6 = arith.constant 0 : i32
    %16 = vector.broadcast %c0_i32_6 : i32 to vector<1x384xi32>
    %17 = arith.cmpi slt, %13, %16 : vector<1x384xi32>
    %c0_i32_7 = arith.constant 0 : i32
    %18 = arith.cmpi slt, %11, %c0_i32_7 : i32
    %19 = vector.broadcast %18 : i1 to vector<1x384xi1>
    %20 = vector.broadcast %19 : vector<1x384xi1> to vector<1x384xi1>
    %21 = arith.xori %17, %20 : vector<1x384xi1>
    %22 = arith.andi %21, %15 : vector<1x384xi1>
    %23 = vector.broadcast %11 : i32 to vector<1x384xi32>
    %24 = arith.addi %13, %23 : vector<1x384xi32>
    %25 = arith.select %22, %24, %13 : vector<1x384xi1>, vector<1x384xi32>
    %c2_i32 = arith.constant 2 : i32
    %26 = vector.broadcast %c2_i32 : i32 to vector<1x384xi32>
    %27 = arith.cmpi eq, %25, %26 : vector<1x384xi32>
    %28 = arith.extui %27 : vector<1x384xi1> to vector<1x384xi32>
    %29 = arith.sitofp %28 : vector<1x384xi32> to vector<1x384xf32>
    %cst_8 = arith.constant 1.875000e-01 : f32
    %30 = vector.broadcast %cst_8 : f32 to vector<1x384xf32>
    %31 = arith.mulf %29, %30 : vector<1x384xf32>
    %cst_9 = arith.constant 6.250000e-02 : f32
    %32 = vector.broadcast %cst_9 : f32 to vector<1x384xf32>
    %33 = arith.addf %31, %32 : vector<1x384xf32>
    %34 = arith.mulf %8, %33 : vector<1x384xf32>
    %35 = vector.shape_cast %34 : vector<1x384xf32> to vector<1x1x384xf32>
    %cst_10 = arith.constant dense<0.000000e+00> : vector<1xf32>
    %36 = vector.multi_reduction <add>, %35, %cst_10 [1, 2] : vector<1x1x384xf32> to vector<1xf32>
    %37 = vector.shape_cast %36 : vector<1xf32> to vector<1x1x1xf32>
    %38 = vector.extract %37[0, 0, 0] : f32 from vector<1x1x1xf32>
    %c0_11 = arith.constant 0 : index
    %c0_12 = arith.constant 0 : index
    %39 = vector.load %arg3[%c0_11, %c0_12] : memref<1x1xf32, #tpu.memory_space<vmem>>, vector<1x1xf32>
    %40 = vector.broadcast %38 : f32 to vector<1x1xf32>
    %41 = arith.addf %39, %40 : vector<1x1xf32>
    %c0_13 = arith.constant 0 : index
    %c0_14 = arith.constant 0 : index
    %42 = vector.load %arg3[%c0_13, %c0_14] : memref<1x1xf32, #tpu.memory_space<vmem>>, vector<1x1xf32>
    tpu.vector_store %arg3[%c0_13, %c0_14], %41 {strides = array<i32>} : memref<1x1xf32, #tpu.memory_space<vmem>>, vector<1x1xf32>,
    return
  }
  func.func @transform_0(%arg0: i32) -> (i32, i32) {
    %c0_i32 = arith.constant 0 : i32
    %c0_i32_0 = arith.constant 0 : i32
    return %arg0, %c0_i32 : i32, i32
  }
  func.func @transform_1(%arg0: i32) -> (i32, i32) {
    %c0_i32 = arith.constant 0 : i32
    %c0_i32_0 = arith.constant 0 : i32
    return %arg0, %c0_i32 : i32, i32
  }
  func.func @transform_2(%arg0: i32) -> (i32, i32) {
    %c0_i32 = arith.constant 0 : i32
    %c0_i32_0 = arith.constant 0 : i32
    %c0_i32_1 = arith.constant 0 : i32
    return %c0_i32, %c0_i32_0 : i32, i32
  }
}

</mosaic_0001>

<bundles_post_ra>
// kernel: tpu_custom_call.1
= control target key start
LH: loop header
LB: loop body
LE: loop exit
PB: predicated region body
PF: predicated region fallthrough
CT: control target
= control target key end

     0   :  { %7 = vsyncpa [#allocation3], 0  ;;  %s311_s0 = inlined_call_operand.hbm [shape: f32[8,384], index: 0, kind: input, shape index: {}]   ;;  %s312_s1 = inlined_call_operand.hbm [shape: f32[8,384], index: 1, kind: input, shape index: {}]   ;;  %s313_s2 = inlined_call_operand.hbm [shape: f32[1,1], index: 2, kind: output, shape index: {}]  }
   0x1   :  { %8 = vsyncpa [#allocation6], 0 }
   0x2   :  { %9 = vsyncpa [#allocation4], 0  ;;  %s259_s9 = smov [#allocation2]   ;;  %s260_s11 = smov [#allocation5]  }
   0x3   :  { %s16_s10 = sshll.u32 %s259_s9, 4  ;;  %s26_s12 = sshll.u32 %s260_s11, 4  ;;  %s17_s10 = int_to_ptr.vmem [resolvable:$true] %s16_s10  ;;  %s27_s12 = int_to_ptr.vmem [resolvable:$true] %s26_s12 }
   0x4   :  { %s201_s13 = scalar_lea.vmem %s17_s10, 384  ;;  %p206_p1 = scmp.lt.s32.totalorder %s17_s10, %s17_s10 }
   0x5   :  { %p202_p0 = scmp.ne.s32.totalorder %s17_s10, %s201_s13  ;;  %p207_p2 = scmp.lt.s32.totalorder %s201_s13, %s201_s13 }
   0x7   :  { %p208_p3 = por %p207_p2, %p206_p1 }
   0x9   :  { %p209_p4 = pnand %p208_p3, %p202_p0 }
   0xb   :  { %212 = shalt.err (!%p209_p4)
}
   0xc   :  { %19 = dma.hbm_to_vmem [thread:$0]  %s311_s0, 384, %s17_s10, [#allocation3]  }
   0xd   :  { %s221_s16 = scalar_lea.vmem %s27_s12, 384  ;;  %p226_p6 = scmp.lt.s32.totalorder %s27_s12, %s27_s12 }
   0xe   :  { %p222_p5 = scmp.ne.s32.totalorder %s27_s12, %s221_s16  ;;  %p227_p7 = scmp.lt.s32.totalorder %s221_s16, %s221_s16 }
  0x10   :  { %p228_p8 = por %p227_p7, %p226_p6 }
  0x12   :  { %p229_p9 = pnand %p228_p8, %p222_p5 }
  0x14   :  { %232 = shalt.err (!%p229_p9)
}
  0x15   :  { %29 = dma.hbm_to_vmem [thread:$0]  %s312_s1, 384, %s27_s12, [#allocation6]  }
  0x16   :  { %253 = dma.done.wait [#allocation3], 384  }
  0x17   :  { %254 = vsyncadd [#allocation3], 4294966912 }
  0x18   :  { %255 = dma.done.wait [#allocation6], 384  }
  0x19   :  { %256 = vsyncadd [#allocation6], 4294966912  ;;  %vm40_vm0 = vcmask 0   ;;  %v72_v0 = vlaneseq  ;;  %v261_v1 = vmov 0.0   ;;  %v42_v11 = vld [vmem:[#allocation2] sm:$0xff]  ;;  %v43_v12 = vld [vmem:[#allocation2 + $0x8] sm:$0xff] }
  0x1a   :  { %41 = vst.msk [vmem:[#allocation7] sm:$0x1] %vm40_vm0, %v261_v1  ;;  %v44_v13 = vld [vmem:[#allocation2 + $0x10] sm:$0xff]  ;;  %v45_v14 = vld [vmem:[#allocation5] sm:$0xff]  ;;  %v46_v15 = vld [vmem:[#allocation5 + $0x8] sm:$0xff]  ;;  %vm142_vm13 = vcmask 1040384  }
  0x1b   :  { %v73_v2 = vand.u32 127, %v72_v0  ;;  %v47_v16 = vld [vmem:[#allocation5 + $0x10] sm:$0xff]  ;;  %v48_v18 = vsub.f32 %v42_v11, %v45_v14  ;;  %v49_v19 = vsub.f32 %v43_v12, %v46_v15  ;;  %s262_s0 = smov [#allocation7]  }
  0x1c   :  { %v50_v20 = vsub.f32 %v44_v13, %v47_v16  ;;  %s168_s1 = sshll.u32 %s262_s0, 4  ;;  %s169_s1 = int_to_ptr.vmem [resolvable:$true] %s168_s1 }
  0x1d   :  { %v74_v3 = vadd.s32 128, %v73_v2  ;;  %v75_v4 = vadd.s32 256, %v73_v2  ;;  %v286_v5 = vmul.u32.u64.low 2863311531, %v73_v2  ;;  %v287_v6 = vmul.u32.u64.high 2863311531, %v73_v2, %v286_v5  ;;  %s233_s20 = scalar_lea.vmem %s169_s1, 16  ;;  %s237_s21 = scalar_lea.vmem %s169_s1, 32 }
  0x1e   :  { %v51_v24 = vmul.f32 %v48_v18, %v48_v18  ;;  %v52_v25 = vmul.f32 %v49_v19, %v49_v19  ;;  %v53_v26 = vmul.f32 %v50_v20, %v50_v20  ;;  %p234_p10 = scmp.ne.s32.totalorder %s169_s1, %s233_s20  ;;  %p238_p11 = scmp.lt.s32.totalorder %s169_s1, %s169_s1 }
  0x1f   :  { %v289_v7 = vmul.u32.u64.low 2863311531, %v74_v3  ;;  %v290_v8 = vmul.u32.u64.high 2863311531, %v74_v3, %v289_v7  ;;  %v292_v9 = vmul.u32.u64.low 2863311531, %v75_v4  ;;  %v293_v10 = vmul.u32.u64.high 2863311531, %v75_v4, %v292_v9  ;;  %p239_p12 = scmp.lt.s32.totalorder %s237_s21, %s233_s20 }
  0x20   :  { %v82_v17 = vshrl.u32 %v287_v6, 1  ;;  %v54_v30 = vrot.slane %v51_v24, 4  ;;  %v60_v31 = vrot.slane %v52_v25, 4  ;;  %v66_v32 = vrot.slane %v53_v26, 4 }
  0x21   :  { %v93_v22 = vshrl.u32 %v290_v8, 1  ;;  %v104_v23 = vshrl.u32 %v293_v10, 1  ;;  %p240_p13 = por %p239_p12, %p238_p11 }
  0x22   :  { %v83_v21 = vmul.u32 3, %v82_v17  ;;  %v55_v35 = vadd.f32 %v54_v30, %v51_v24  ;;  %v61_v36 = vadd.f32 %v60_v31, %v52_v25  ;;  %v67_v37 = vadd.f32 %v66_v32, %v53_v26  ;;  %v157_v17 = vld [vmem:[#allocation7] sm:$0x1] }
  0x23   :  { %v94_v28 = vmul.u32 3, %v93_v22  ;;  %v105_v29 = vmul.u32 3, %v104_v23  ;;  %p241_p0 = pnand %p240_p13, %p234_p10 }
  0x24   :  { %v84_v27 = vsub.s32 %v73_v2, %v83_v21  ;;  %v56_v40 = vrot.slane %v55_v35, 2  ;;  %v62_v41 = vrot.slane %v61_v36, 2  ;;  %v68_v42 = vrot.slane %v67_v37, 2 }
  0x25   :  { %v95_v33 = vsub.s32 %v74_v3, %v94_v28  ;;  %v106_v34 = vsub.s32 %v75_v4, %v105_v29 }
  0x26   :  { %vm109_vm1 = vcmp.ne.s32.totalorder %v84_v27, 0  ;;  %vm112_vm2 = vcmp.lt.s32.totalorder %v84_v27, 0  ;;  %v118_v39 = vadd.s32 3, %v84_v27  ;;  %v57_v46 = vadd.f32 %v56_v40, %v55_v35 }
  0x27   :  { %vm298_vm3 = vmand %vm112_vm2, %vm109_vm1  ;;  %vm110_vm4 = vcmp.ne.s32.totalorder %v95_v33, 0  ;;  %vm111_vm5 = vcmp.ne.s32.totalorder %v106_v34, 0  ;;  %vm113_vm6 = vcmp.lt.s32.totalorder %v95_v33, 0  ;;  %vm114_vm7 = vcmp.lt.s32.totalorder %v106_v34, 0 }
  0x28   :  { %vm116_vm8 = vmand %vm113_vm6, %vm110_vm4  ;;  %v119_v43 = vadd.s32 3, %v95_v33  ;;  %v120_v44 = vadd.s32 3, %v106_v34  ;;  %v121_v45 = vsel %vm298_vm3, %v118_v39, %v84_v27  ;;  %v63_v47 = vadd.f32 %v62_v41, %v61_v36 }
  0x29   :  { %vm117_vm9 = vmand %vm114_vm7, %vm111_vm5  ;;  %v69_v48 = vadd.f32 %v68_v42, %v67_v37  ;;  %vm124_vm10 = vcmp.eq.s32.totalorder %v121_v45, 2  ;;  %v58_v51 = vrot.slane %v57_v46, 1 }
  0x2a   :  { %v122_v49 = vsel %vm116_vm8, %v119_v43, %v95_v33  ;;  %v123_v50 = vsel %vm117_vm9, %v120_v44, %v106_v34  ;;  %v64_v52 = vrot.slane %v63_v47, 1  ;;  %v178_v54 = vsel %vm124_vm10, 1.0, %v261_v1 }
  0x2b   :  { %vm125_vm11 = vcmp.eq.s32.totalorder %v122_v49, 2  ;;  %v70_v53 = vrot.slane %v69_v48, 1  ;;  %vm126_vm12 = vcmp.eq.s32.totalorder %v123_v50, 2  ;;  %v59_v57 = vadd.f32 %v58_v51, %v57_v46 }
  0x2c   :  { %v179_v55 = vsel %vm125_vm11, 1.0, %v261_v1  ;;  %v180_v56 = vsel %vm126_vm12, 1.0, %v261_v1  ;;  %v133_v58 = vmul.f32 0.1875, %v178_v54  ;;  %v65_v59 = vadd.f32 %v64_v52, %v63_v47 }
  0x2d   :  { %v71_v60 = vadd.f32 %v70_v53, %v69_v48  ;;  %v134_v61 = vmul.f32 0.1875, %v179_v55  ;;  %v135_v62 = vmul.f32 0.1875, %v180_v56 }
  0x2e   :  { %v136_v63 = vadd.f32 0.0625, %v133_v58 }
  0x2f   :  { %v137_v0 = vadd.f32 0.0625, %v134_v61  ;;  %v138_v2 = vadd.f32 0.0625, %v135_v62 }
  0x30   :  { %v139_v3 = vmul.f32 %v136_v63, %v59_v57 }
  0x31   :  { %v140_v4 = vmul.f32 %v137_v0, %v65_v59  ;;  %v141_v5 = vmul.f32 %v138_v2, %v71_v60 }
  0x32   :  { %v143_v6 = vsel %vm142_vm13, %v139_v3, 0.0 }
  0x33   :  { %v144_v7 = vsel %vm142_vm13, %v140_v4, 0.0  ;;  %v146_v8 = vsel %vm142_vm13, %v141_v5, 0.0 }
  0x34   :  { %v145_v9 = vadd.f32 %v144_v7, %v143_v6 }
  0x36   :  { %v147_v10 = vadd.f32 %v146_v8, %v145_v9 }
  0x38   :  { %148 = vadd.xlane.f32.xlu0 %v147_v10 }
  0xc1   :  { %v149_v1 = vpop.xlane.xlu0 %148 }
  0xc2   :  { %v150_v11 = vrot.slane %v149_v1, 4 }
  0xc4   :  { %v151_v12 = vadd.f32 %v150_v11, %v149_v1 }
  0xc6   :  { %v152_v13 = vrot.slane %v151_v12, 2 }
  0xc8   :  { %v153_v14 = vadd.f32 %v152_v13, %v151_v12 }
  0xca   :  { %v154_v15 = vrot.slane %v153_v14, 1 }
  0xcc   :  { %v155_v16 = vadd.f32 %v154_v15, %v153_v14 }
  0xce   :  { %187 = vpush %v155_v16 }
  0xff   :  { %s188_s19 = spop %187 }
 0x100   :  { %v158_v18 = vstv %s188_s19 }
 0x101   :  { %v159_v19 = vadd.f32 %v158_v18, %v157_v17 }
 0x103   :  { %161 = vst.msk [vmem:[#allocation7] sm:$0x1] %vm40_vm0, %v159_v19 }
 0x104   :  { %244 = shalt.err (!%p241_p0)
}
 0x105   :  { %171 = dma.vmem_to_hbm [thread:$0]  %s169_s1, 16, %s313_s2, [#allocation4]  }
 0x106   :  { %257 = dma.done.wait [#allocation4], 16  }
 0x107   :  { %258 = vsyncadd [#allocation4], 4294967280 }
 0x108   :  { %175 = vsyncpa [#allocation3], 1 }
 0x109   :  { %176 = vsyncpa [#allocation6], 1 }
 0x10a   :  { %177 = vsyncpa [#allocation4], 1 }

</bundles_post_ra>
